<compile_context>
chip_gen: v6e
topology: v6e:2x2x1
jax: 0.10.0
libtpu: 0.0.40
codegen_flags: <defaults>
</compile_context>

<pallas_src>
import functools

import jax
import jax.numpy as jnp
from jax.experimental import pallas as pl
from jax.experimental.pallas import tpu as pltpu

EPS = 1e-5

# Production note (v6e / v7x, large shapes): set this to jnp.bfloat16 so the
# MXU runs native bf16 passes (accumulation stays f32 via
# preferred_element_type).  Kept f32 here so the toy-size exactness check can
# stay at 1e-3; keep f32 on v5e (no bf16 VPU/EUP, win is MXU-only anyway).
MXU_DTYPE = jnp.float32


def double_conv_kernel(x_ref, w1_ref, w2_ref, bn_ref, mask_ref, o_ref,
                       *, N, H, W):
    # x_ref   : (Cin_p, M)       input canvas: channels on sublanes, N*H*W lanes
    # w1_ref  : (9, Cout, Cin_p) conv1 weights, tap-major (t = dy*3 + dx)
    # w2_ref  : (9, Cout, Cout)  conv2 weights, tap-major
    # bn_ref  : (Cout, 4)        packed [gamma1, beta1, gamma2, beta2]
    # mask_ref: (1, M)           1.0 where (h < H-2, w < W-2), else 0.0
    # o_ref   : (Cout, M)        output canvas (valid region = h<H-2, w<W-2)
    f32 = jnp.float32
    H1, W1 = H - 2, W - 2
    M = N * H * W
    inv_count = 1.0 / float(N * H1 * W1)

    maskf = mask_ref[...]                                   # (1, M)

    def conv3x3(src, w_ref, base_off):
        # out[co, m] = sum_{t, c} w[t, co, c] * src[c, (m + off(t)) % M].
        # Cyclic wrap-around only pollutes ring positions, which are excluded
        # from BN stats and never reach the final output.
        acc = None
        for dy in range(3):
            for dx in range(3):
                off = dy * W + dx + base_off
                shift = (-off) % M          # roll(x, s)[m] == x[(m - s) % M]
                tap = src if shift == 0 else pltpu.roll(src, shift=shift, axis=1)
                t = dy * 3 + dx
                part = jnp.dot(w_ref[t], tap.astype(w_ref.dtype),
                               preferred_element_type=f32)
                acc = part if acc is None else acc + part
        return acc                                          # (Cout, M) f32

    def bn_relu(acc, g, be, zero_ring):
        # Training-mode BN over valid positions (two-pass, biased variance),
        # fused per-channel scale/shift, then ReLU.  Conv bias is cancelled
        # exactly by the mean subtraction, so it was never added.
        mean = jnp.sum(acc * maskf, axis=1, keepdims=True) * inv_count
        cen = (acc - mean) * maskf
        var = jnp.sum(cen * cen, axis=1, keepdims=True) * inv_count
        scale = g * jax.lax.rsqrt(var + EPS)
        shift = be - mean * scale
        out = jnp.maximum(acc * scale + shift, 0.0)
        if zero_ring:
            out = out * maskf         # ring -> exact zeros (conv2's padding=1)
        return out

    # ---- conv1: 3x3, stride 1, no padding -> taps read m + dy*W + dx -------
    acc1 = conv3x3(x_ref[...], w1_ref, 0)
    h = bn_relu(acc1, bn_ref[:, 0:1], bn_ref[:, 1:2], zero_ring=True)

    # ---- conv2: 3x3, stride 1, padding 1 -> taps read m + (dy-1)*W + (dx-1);
    # out-of-range sources hit the zeroed ring, i.e. exact padding zeros. ----
    acc2 = conv3x3(h, w2_ref, -(W + 1))
    y = bn_relu(acc2, bn_ref[:, 2:3], bn_ref[:, 3:4], zero_ring=False)

    o_ref[...] = y.astype(o_ref.dtype)                      # lane-dense store


@jax.jit
def double_conv(x_nchw, params):
    # NCHW -> (C, N*H*W) lane-dense canvas; tap-major weights; packed BN
    # params; precomputed valid mask; fused Pallas kernel; slice/transpose back
    # to NCHW in XLA.
    # TODO(synk): when chaining DoubleConvs inside the Decoder, keep
    #             activations in the (C, M) canvas layout between pallas_calls
    #             and only convert to/from NCHW at model boundaries.
    N, Cin, H, W = x_nchw.shape
    Cout = params["w1"].shape[-1]
    H1, W1 = H - 2, W - 2
    M = N * H * W
    Cin_p = -(-Cin // 8) * 8           # sublane-align the rolled canvas

    x = jnp.transpose(x_nchw, (1, 0, 2, 3)).reshape(Cin, M).astype(jnp.float32)
    x = jnp.pad(x, ((0, Cin_p - Cin), (0, 0)))

    # HWIO (3,3,Ci,Co) -> (9, Co, Ci_p): tap-major, output channels on rows.
    w1 = jnp.transpose(params["w1"].reshape(9, Cin, Cout), (0, 2, 1))
    w1 = jnp.pad(w1, ((0, 0), (0, 0), (0, Cin_p - Cin))).astype(MXU_DTYPE)
    w2 = jnp.transpose(params["w2"].reshape(9, Cout, Cout),
                       (0, 2, 1)).astype(MXU_DTYPE)

    # Conv biases b1/b2 are dropped: training-mode BN cancels them exactly.
    bn = jnp.stack([params["g1"], params["be1"], params["g2"], params["be2"]],
                   axis=1).astype(jnp.float32)               # (Cout, 4)

    # Valid-region mask, built here so the kernel has no iota / div / mod.
    idx = jnp.arange(M, dtype=jnp.int32)
    maskf = ((((idx % (H * W)) // W) < H1) & ((idx % W) < W1))
    maskf = maskf.astype(jnp.float32).reshape(1, M)

    kernel = functools.partial(double_conv_kernel, N=N, H=H, W=W)

    args = (x, w1, w2, bn, maskf)
    in_specs = [
        pl.BlockSpec(a.shape, (lambda i, nd=a.ndim: (0,) * nd)) for a in args
    ]
    # Lane-dense (Cout, M) output (M = 4*128): unmasked full-width stores.
    out_spec = pl.BlockSpec((Cout, M), lambda i: (0, 0))

    # TODO(synk): production-size DoubleConv (e.g. 256x256x64) needs a
    #             halo-tiled grid over (N, H-tiles) marked "parallel" (uses
    #             v7x's second TensorCore), cross-tile two-pass BN, bf16 MXU
    #             operands on v6e/v7x, and vmem_limit_bytes re-derived for
    #             v7x's 64 MiB VMEM; the per-tap accumulation above already
    #             avoids the 9x im2col VMEM blow-up for that path.
    y = pl.pallas_call(
        kernel,
        out_shape=jax.ShapeDtypeStruct((Cout, M), jnp.float32),
        grid=(1,),
        in_specs=in_specs,
        out_specs=out_spec,
        compiler_params=pltpu.CompilerParams(
            dimension_semantics=("arbitrary",)),
    )(*args)

    # Canvas -> NCHW: keep only the valid H1 x W1 region.
    y = y.reshape(Cout, N, H, W)[:, :, :H1, :W1]
    return jnp.transpose(y, (1, 0, 2, 3))


def ref_double_conv(x_nchw, p):
    # Pure-JAX reference (training-mode BN, with conv biases) for checking.
    x = jnp.transpose(x_nchw, (0, 2, 3, 1)).astype(jnp.float32)
    dn = ("NHWC", "HWIO", "NHWC")
    h = jax.lax.conv_general_dilated(x, p["w1"], (1, 1), "VALID",
                                     dimension_numbers=dn) + p["b1"]
    m = h.mean((0, 1, 2)); v = ((h - m) ** 2).mean((0, 1, 2))
    h = (h - m) / jnp.sqrt(v + EPS) * p["g1"] + p["be1"]
    h = jnp.maximum(h, 0.0)
    h = jax.lax.conv_general_dilated(h, p["w2"], (1, 1), "SAME",
                                     dimension_numbers=dn) + p["b2"]
    m = h.mean((0, 1, 2)); v = ((h - m) ** 2).mean((0, 1, 2))
    h = (h - m) / jnp.sqrt(v + EPS) * p["g2"] + p["be2"]
    h = jnp.maximum(h, 0.0)
    return jnp.transpose(h, (0, 3, 1, 2))


if __name__ == "__main__":
    key = jax.random.PRNGKey(0)
    N, Cin, Cout, HW = 2, 4, 8, 16
    ks = jax.random.split(key, 9)

    x = jax.random.normal(ks[0], (N, Cin, HW, HW), jnp.float32)  # NCHW
    params = {
        "w1": 0.2 * jax.random.normal(ks[1], (3, 3, Cin, Cout), jnp.float32),
        "b1": 0.1 * jax.random.normal(ks[2], (Cout,), jnp.float32),
        "g1": 1.0 + 0.1 * jax.random.normal(ks[3], (Cout,), jnp.float32),
        "be1": 0.1 * jax.random.normal(ks[4], (Cout,), jnp.float32),
        "w2": 0.2 * jax.random.normal(ks[5], (3, 3, Cout, Cout), jnp.float32),
        "b2": 0.1 * jax.random.normal(ks[6], (Cout,), jnp.float32),
        "g2": 1.0 + 0.1 * jax.random.normal(ks[7], (Cout,), jnp.float32),
        "be2": 0.1 * jax.random.normal(ks[8], (Cout,), jnp.float32),
    }

    out = jax.block_until_ready(double_conv(x, params))
    assert out.shape == (N, Cout, HW - 2, HW - 2), out.shape

    ref = jax.block_until_ready(ref_double_conv(x, params))
    assert jnp.allclose(out, ref, rtol=1e-3, atol=1e-3), float(
        jnp.max(jnp.abs(out - ref)))

    print("KERNEL_OK")
</pallas_src>

<mosaic_0001>
module attributes {stable_mosaic.version = 11 : i64} {
  func.func @double_conv_kernel(%arg0: i32, %arg1: memref<8x512xf32, #tpu.memory_space<vmem>>, %arg2: memref<9x8x8xf32, #tpu.memory_space<vmem>>, %arg3: memref<9x8x8xf32, #tpu.memory_space<vmem>>, %arg4: memref<8x4xf32, #tpu.memory_space<vmem>>, %arg5: memref<1x512xf32, #tpu.memory_space<vmem>>, %arg6: memref<8x512xf32, #tpu.memory_space<vmem>>) attributes {dimension_semantics = [#tpu.dimension_semantics<arbitrary>], iteration_bounds = array<i64: 1>, scalar_prefetch = 0 : i64, scratch_operands = 0 : i64, tpu.core_type = #tpu.core_type<tc>, window_params = [{pipeline_mode = #tpu.pipeline_mode<synchronous>, transform_indices = @transform_0, window_bounds = array<i64: 8, 512>}, {pipeline_mode = #tpu.pipeline_mode<synchronous>, transform_indices = @transform_1, window_bounds = array<i64: 9, 8, 8>}, {pipeline_mode = #tpu.pipeline_mode<synchronous>, transform_indices = @transform_2, window_bounds = array<i64: 9, 8, 8>}, {pipeline_mode = #tpu.pipeline_mode<synchronous>, transform_indices = @transform_3, window_bounds = array<i64: 8, 4>}, {pipeline_mode = #tpu.pipeline_mode<synchronous>, transform_indices = @transform_4, window_bounds = array<i64: 1, 512>}, {pipeline_mode = #tpu.pipeline_mode<synchronous>, transform_indices = @transform_5, window_bounds = array<i64: 8, 512>}]} {
    %c0 = arith.constant 0 : index
    %c0_0 = arith.constant 0 : index
    %0 = vector.load %arg5[%c0, %c0_0] : memref<1x512xf32, #tpu.memory_space<vmem>>, vector<1x512xf32>
    %c0_1 = arith.constant 0 : index
    %c0_2 = arith.constant 0 : index
    %1 = vector.load %arg1[%c0_1, %c0_2] : memref<8x512xf32, #tpu.memory_space<vmem>>, vector<8x512xf32>
    %c0_3 = arith.constant 0 : index
    %c0_4 = arith.constant 0 : index
    %c0_5 = arith.constant 0 : index
    %2 = vector.load %arg2[%c0_3, %c0_4, %c0_5] : memref<9x8x8xf32, #tpu.memory_space<vmem>>, vector<1x8x8xf32>
    %3 = vector.shape_cast %2 : vector<1x8x8xf32> to vector<8x8xf32>
    %cst = arith.constant dense<0.000000e+00> : vector<8x512xf32>
    %4 = tpu.matmul %3, %1, %cst {dimension_numbers = #tpu.dot_dimension_numbers<[1], [0], [0], [1], [0, 0, 1, 1], [], []>} : vector<8x8xf32>, vector<8x512xf32>, vector<8x512xf32> -> vector<8x512xf32>
    %c511_i32 = arith.constant 511 : i32
    %5 = tpu.dynamic_rotate %1 by %c511_i32 dim 1 : vector<8x512xf32>, i32 -> vector<8x512xf32>
    %c1 = arith.constant 1 : index
    %c0_6 = arith.constant 0 : index
    %c0_7 = arith.constant 0 : index
    %6 = vector.load %arg2[%c1, %c0_6, %c0_7] : memref<9x8x8xf32, #tpu.memory_space<vmem>>, vector<1x8x8xf32>
    %7 = vector.shape_cast %6 : vector<1x8x8xf32> to vector<8x8xf32>
    %cst_8 = arith.constant dense<0.000000e+00> : vector<8x512xf32>
    %8 = tpu.matmul %7, %5, %cst_8 {dimension_numbers = #tpu.dot_dimension_numbers<[1], [0], [0], [1], [0, 0, 1, 1], [], []>} : vector<8x8xf32>, vector<8x512xf32>, vector<8x512xf32> -> vector<8x512xf32>
    %9 = arith.addf %4, %8 : vector<8x512xf32>
    %c510_i32 = arith.constant 510 : i32
    %10 = tpu.dynamic_rotate %1 by %c510_i32 dim 1 : vector<8x512xf32>, i32 -> vector<8x512xf32>
    %c2 = arith.constant 2 : index
    %c0_9 = arith.constant 0 : index
    %c0_10 = arith.constant 0 : index
    %11 = vector.load %arg2[%c2, %c0_9, %c0_10] : memref<9x8x8xf32, #tpu.memory_space<vmem>>, vector<1x8x8xf32>
    %12 = vector.shape_cast %11 : vector<1x8x8xf32> to vector<8x8xf32>
    %cst_11 = arith.constant dense<0.000000e+00> : vector<8x512xf32>
    %13 = tpu.matmul %12, %10, %cst_11 {dimension_numbers = #tpu.dot_dimension_numbers<[1], [0], [0], [1], [0, 0, 1, 1], [], []>} : vector<8x8xf32>, vector<8x512xf32>, vector<8x512xf32> -> vector<8x512xf32>
    %14 = arith.addf %9, %13 : vector<8x512xf32>
    %c496_i32 = arith.constant 496 : i32
    %15 = tpu.dynamic_rotate %1 by %c496_i32 dim 1 : vector<8x512xf32>, i32 -> vector<8x512xf32>
    %c3 = arith.constant 3 : index
    %c0_12 = arith.constant 0 : index
    %c0_13 = arith.constant 0 : index
    %16 = vector.load %arg2[%c3, %c0_12, %c0_13] : memref<9x8x8xf32, #tpu.memory_space<vmem>>, vector<1x8x8xf32>
    %17 = vector.shape_cast %16 : vector<1x8x8xf32> to vector<8x8xf32>
    %cst_14 = arith.constant dense<0.000000e+00> : vector<8x512xf32>
    %18 = tpu.matmul %17, %15, %cst_14 {dimension_numbers = #tpu.dot_dimension_numbers<[1], [0], [0], [1], [0, 0, 1, 1], [], []>} : vector<8x8xf32>, vector<8x512xf32>, vector<8x512xf32> -> vector<8x512xf32>
    %19 = arith.addf %14, %18 : vector<8x512xf32>
    %c495_i32 = arith.constant 495 : i32
    %20 = tpu.dynamic_rotate %1 by %c495_i32 dim 1 : vector<8x512xf32>, i32 -> vector<8x512xf32>
    %c4 = arith.constant 4 : index
    %c0_15 = arith.constant 0 : index
    %c0_16 = arith.constant 0 : index
    %21 = vector.load %arg2[%c4, %c0_15, %c0_16] : memref<9x8x8xf32, #tpu.memory_space<vmem>>, vector<1x8x8xf32>
    %22 = vector.shape_cast %21 : vector<1x8x8xf32> to vector<8x8xf32>
    %cst_17 = arith.constant dense<0.000000e+00> : vector<8x512xf32>
    %23 = tpu.matmul %22, %20, %cst_17 {dimension_numbers = #tpu.dot_dimension_numbers<[1], [0], [0], [1], [0, 0, 1, 1], [], []>} : vector<8x8xf32>, vector<8x512xf32>, vector<8x512xf32> -> vector<8x512xf32>
    %24 = arith.addf %19, %23 : vector<8x512xf32>
    %c494_i32 = arith.constant 494 : i32
    %25 = tpu.dynamic_rotate %1 by %c494_i32 dim 1 : vector<8x512xf32>, i32 -> vector<8x512xf32>
    %c5 = arith.constant 5 : index
    %c0_18 = arith.constant 0 : index
    %c0_19 = arith.constant 0 : index
    %26 = vector.load %arg2[%c5, %c0_18, %c0_19] : memref<9x8x8xf32, #tpu.memory_space<vmem>>, vector<1x8x8xf32>
    %27 = vector.shape_cast %26 : vector<1x8x8xf32> to vector<8x8xf32>
    %cst_20 = arith.constant dense<0.000000e+00> : vector<8x512xf32>
    %28 = tpu.matmul %27, %25, %cst_20 {dimension_numbers = #tpu.dot_dimension_numbers<[1], [0], [0], [1], [0, 0, 1, 1], [], []>} : vector<8x8xf32>, vector<8x512xf32>, vector<8x512xf32> -> vector<8x512xf32>
    %29 = arith.addf %24, %28 : vector<8x512xf32>
    %c480_i32 = arith.constant 480 : i32
    %30 = tpu.dynamic_rotate %1 by %c480_i32 dim 1 : vector<8x512xf32>, i32 -> vector<8x512xf32>
    %c6 = arith.constant 6 : index
    %c0_21 = arith.constant 0 : index
    %c0_22 = arith.constant 0 : index
    %31 = vector.load %arg2[%c6, %c0_21, %c0_22] : memref<9x8x8xf32, #tpu.memory_space<vmem>>, vector<1x8x8xf32>
    %32 = vector.shape_cast %31 : vector<1x8x8xf32> to vector<8x8xf32>
    %cst_23 = arith.constant dense<0.000000e+00> : vector<8x512xf32>
    %33 = tpu.matmul %32, %30, %cst_23 {dimension_numbers = #tpu.dot_dimension_numbers<[1], [0], [0], [1], [0, 0, 1, 1], [], []>} : vector<8x8xf32>, vector<8x512xf32>, vector<8x512xf32> -> vector<8x512xf32>
    %34 = arith.addf %29, %33 : vector<8x512xf32>
    %c479_i32 = arith.constant 479 : i32
    %35 = tpu.dynamic_rotate %1 by %c479_i32 dim 1 : vector<8x512xf32>, i32 -> vector<8x512xf32>
    %c7 = arith.constant 7 : index
    %c0_24 = arith.constant 0 : index
    %c0_25 = arith.constant 0 : index
    %36 = vector.load %arg2[%c7, %c0_24, %c0_25] : memref<9x8x8xf32, #tpu.memory_space<vmem>>, vector<1x8x8xf32>
    %37 = vector.shape_cast %36 : vector<1x8x8xf32> to vector<8x8xf32>
    %cst_26 = arith.constant dense<0.000000e+00> : vector<8x512xf32>
    %38 = tpu.matmul %37, %35, %cst_26 {dimension_numbers = #tpu.dot_dimension_numbers<[1], [0], [0], [1], [0, 0, 1, 1], [], []>} : vector<8x8xf32>, vector<8x512xf32>, vector<8x512xf32> -> vector<8x512xf32>
    %39 = arith.addf %34, %38 : vector<8x512xf32>
    %c478_i32 = arith.constant 478 : i32
    %40 = tpu.dynamic_rotate %1 by %c478_i32 dim 1 : vector<8x512xf32>, i32 -> vector<8x512xf32>
    %c8 = arith.constant 8 : index
    %c0_27 = arith.constant 0 : index
    %c0_28 = arith.constant 0 : index
    %41 = vector.load %arg2[%c8, %c0_27, %c0_28] : memref<9x8x8xf32, #tpu.memory_space<vmem>>, vector<1x8x8xf32>
    %42 = vector.shape_cast %41 : vector<1x8x8xf32> to vector<8x8xf32>
    %cst_29 = arith.constant dense<0.000000e+00> : vector<8x512xf32>
    %43 = tpu.matmul %42, %40, %cst_29 {dimension_numbers = #tpu.dot_dimension_numbers<[1], [0], [0], [1], [0, 0, 1, 1], [], []>} : vector<8x8xf32>, vector<8x512xf32>, vector<8x512xf32> -> vector<8x512xf32>
    %44 = arith.addf %39, %43 : vector<8x512xf32>
    %c0_30 = arith.constant 0 : index
    %c0_31 = arith.constant 0 : index
    %45 = vector.load %arg4[%c0_30, %c0_31] : memref<8x4xf32, #tpu.memory_space<vmem>>, vector<8x1xf32>
    %c0_32 = arith.constant 0 : index
    %c1_33 = arith.constant 1 : index
    %46 = vector.load %arg4[%c0_32, %c1_33] : memref<8x4xf32, #tpu.memory_space<vmem>>, vector<8x1xf32>
    %47 = vector.broadcast %0 : vector<1x512xf32> to vector<8x512xf32>
    %48 = arith.mulf %44, %47 : vector<8x512xf32>
    %cst_34 = arith.constant dense<0.000000e+00> : vector<8xf32>
    %49 = vector.multi_reduction <add>, %48, %cst_34 [1] : vector<8x512xf32> to vector<8xf32>
    %50 = vector.shape_cast %49 : vector<8xf32> to vector<8x1xf32>
    %cst_35 = arith.constant 0.00255102036 : f32
    %51 = vector.broadcast %cst_35 : f32 to vector<8x1xf32>
    %52 = arith.mulf %50, %51 : vector<8x1xf32>
    %53 = vector.broadcast %52 : vector<8x1xf32> to vector<8x512xf32>
    %54 = arith.subf %44, %53 : vector<8x512xf32>
    %55 = vector.broadcast %0 : vector<1x512xf32> to vector<8x512xf32>
    %56 = arith.mulf %54, %55 : vector<8x512xf32>
    %57 = arith.mulf %56, %56 : vector<8x512xf32>
    %cst_36 = arith.constant dense<0.000000e+00> : vector<8xf32>
    %58 = vector.multi_reduction <add>, %57, %cst_36 [1] : vector<8x512xf32> to vector<8xf32>
    %59 = vector.shape_cast %58 : vector<8xf32> to vector<8x1xf32>
    %cst_37 = arith.constant 0.00255102036 : f32
    %60 = vector.broadcast %cst_37 : f32 to vector<8x1xf32>
    %61 = arith.mulf %59, %60 : vector<8x1xf32>
    %cst_38 = arith.constant 9.99999974E-6 : f32
    %62 = vector.broadcast %cst_38 : f32 to vector<8x1xf32>
    %63 = arith.addf %61, %62 : vector<8x1xf32>
    %64 = math.rsqrt %63 : vector<8x1xf32>
    %65 = arith.mulf %45, %64 : vector<8x1xf32>
    %66 = arith.mulf %52, %65 : vector<8x1xf32>
    %67 = arith.subf %46, %66 : vector<8x1xf32>
    %68 = vector.broadcast %65 : vector<8x1xf32> to vector<8x512xf32>
    %69 = arith.mulf %44, %68 : vector<8x512xf32>
    %70 = vector.broadcast %67 : vector<8x1xf32> to vector<8x512xf32>
    %71 = arith.addf %69, %70 : vector<8x512xf32>
    %cst_39 = arith.constant 0.000000e+00 : f32
    %72 = vector.broadcast %cst_39 : f32 to vector<8x512xf32>
    %73 = arith.maximumf %71, %72 : vector<8x512xf32>
    %74 = vector.broadcast %0 : vector<1x512xf32> to vector<8x512xf32>
    %75 = arith.mulf %73, %74 : vector<8x512xf32>
    %c17_i32 = arith.constant 17 : i32
    %76 = tpu.dynamic_rotate %75 by %c17_i32 dim 1 : vector<8x512xf32>, i32 -> vector<8x512xf32>
    %c0_40 = arith.constant 0 : index
    %c0_41 = arith.constant 0 : index
    %c0_42 = arith.constant 0 : index
    %77 = vector.load %arg3[%c0_40, %c0_41, %c0_42] : memref<9x8x8xf32, #tpu.memory_space<vmem>>, vector<1x8x8xf32>
    %78 = vector.shape_cast %77 : vector<1x8x8xf32> to vector<8x8xf32>
    %cst_43 = arith.constant dense<0.000000e+00> : vector<8x512xf32>
    %79 = tpu.matmul %78, %76, %cst_43 {dimension_numbers = #tpu.dot_dimension_numbers<[1], [0], [0], [1], [0, 0, 1, 1], [], []>} : vector<8x8xf32>, vector<8x512xf32>, vector<8x512xf32> -> vector<8x512xf32>
    %c16_i32 = arith.constant 16 : i32
    %80 = tpu.dynamic_rotate %75 by %c16_i32 dim 1 : vector<8x512xf32>, i32 -> vector<8x512xf32>
    %c1_44 = arith.constant 1 : index
    %c0_45 = arith.constant 0 : index
    %c0_46 = arith.constant 0 : index
    %81 = vector.load %arg3[%c1_44, %c0_45, %c0_46] : memref<9x8x8xf32, #tpu.memory_space<vmem>>, vector<1x8x8xf32>
    %82 = vector.shape_cast %81 : vector<1x8x8xf32> to vector<8x8xf32>
    %cst_47 = arith.constant dense<0.000000e+00> : vector<8x512xf32>
    %83 = tpu.matmul %82, %80, %cst_47 {dimension_numbers = #tpu.dot_dimension_numbers<[1], [0], [0], [1], [0, 0, 1, 1], [], []>} : vector<8x8xf32>, vector<8x512xf32>, vector<8x512xf32> -> vector<8x512xf32>
    %84 = arith.addf %79, %83 : vector<8x512xf32>
    %c15_i32 = arith.constant 15 : i32
    %85 = tpu.dynamic_rotate %75 by %c15_i32 dim 1 : vector<8x512xf32>, i32 -> vector<8x512xf32>
    %c2_48 = arith.constant 2 : index
    %c0_49 = arith.constant 0 : index
    %c0_50 = arith.constant 0 : index
    %86 = vector.load %arg3[%c2_48, %c0_49, %c0_50] : memref<9x8x8xf32, #tpu.memory_space<vmem>>, vector<1x8x8xf32>
    %87 = vector.shape_cast %86 : vector<1x8x8xf32> to vector<8x8xf32>
    %cst_51 = arith.constant dense<0.000000e+00> : vector<8x512xf32>
    %88 = tpu.matmul %87, %85, %cst_51 {dimension_numbers = #tpu.dot_dimension_numbers<[1], [0], [0], [1], [0, 0, 1, 1], [], []>} : vector<8x8xf32>, vector<8x512xf32>, vector<8x512xf32> -> vector<8x512xf32>
    %89 = arith.addf %84, %88 : vector<8x512xf32>
    %c1_i32 = arith.constant 1 : i32
    %90 = tpu.dynamic_rotate %75 by %c1_i32 dim 1 : vector<8x512xf32>, i32 -> vector<8x512xf32>
    %c3_52 = arith.constant 3 : index
    %c0_53 = arith.constant 0 : index
    %c0_54 = arith.constant 0 : index
    %91 = vector.load %arg3[%c3_52, %c0_53, %c0_54] : memref<9x8x8xf32, #tpu.memory_space<vmem>>, vector<1x8x8xf32>
    %92 = vector.shape_cast %91 : vector<1x8x8xf32> to vector<8x8xf32>
    %cst_55 = arith.constant dense<0.000000e+00> : vector<8x512xf32>
    %93 = tpu.matmul %92, %90, %cst_55 {dimension_numbers = #tpu.dot_dimension_numbers<[1], [0], [0], [1], [0, 0, 1, 1], [], []>} : vector<8x8xf32>, vector<8x512xf32>, vector<8x512xf32> -> vector<8x512xf32>
    %94 = arith.addf %89, %93 : vector<8x512xf32>
    %c4_56 = arith.constant 4 : index
    %c0_57 = arith.constant 0 : index
    %c0_58 = arith.constant 0 : index
    %95 = vector.load %arg3[%c4_56, %c0_57, %c0_58] : memref<9x8x8xf32, #tpu.memory_space<vmem>>, vector<1x8x8xf32>
    %96 = vector.shape_cast %95 : vector<1x8x8xf32> to vector<8x8xf32>
    %cst_59 = arith.constant dense<0.000000e+00> : vector<8x512xf32>
    %97 = tpu.matmul %96, %75, %cst_59 {dimension_numbers = #tpu.dot_dimension_numbers<[1], [0], [0], [1], [0, 0, 1, 1], [], []>} : vector<8x8xf32>, vector<8x512xf32>, vector<8x512xf32> -> vector<8x512xf32>
    %98 = arith.addf %94, %97 : vector<8x512xf32>
    %c511_i32_60 = arith.constant 511 : i32
    %99 = tpu.dynamic_rotate %75 by %c511_i32_60 dim 1 : vector<8x512xf32>, i32 -> vector<8x512xf32>
    %c5_61 = arith.constant 5 : index
    %c0_62 = arith.constant 0 : index
    %c0_63 = arith.constant 0 : index
    %100 = vector.load %arg3[%c5_61, %c0_62, %c0_63] : memref<9x8x8xf32, #tpu.memory_space<vmem>>, vector<1x8x8xf32>
    %101 = vector.shape_cast %100 : vector<1x8x8xf32> to vector<8x8xf32>
    %cst_64 = arith.constant dense<0.000000e+00> : vector<8x512xf32>
    %102 = tpu.matmul %101, %99, %cst_64 {dimension_numbers = #tpu.dot_dimension_numbers<[1], [0], [0], [1], [0, 0, 1, 1], [], []>} : vector<8x8xf32>, vector<8x512xf32>, vector<8x512xf32> -> vector<8x512xf32>
    %103 = arith.addf %98, %102 : vector<8x512xf32>
    %c497_i32 = arith.constant 497 : i32
    %104 = tpu.dynamic_rotate %75 by %c497_i32 dim 1 : vector<8x512xf32>, i32 -> vector<8x512xf32>
    %c6_65 = arith.constant 6 : index
    %c0_66 = arith.constant 0 : index
    %c0_67 = arith.constant 0 : index
    %105 = vector.load %arg3[%c6_65, %c0_66, %c0_67] : memref<9x8x8xf32, #tpu.memory_space<vmem>>, vector<1x8x8xf32>
    %106 = vector.shape_cast %105 : vector<1x8x8xf32> to vector<8x8xf32>
    %cst_68 = arith.constant dense<0.000000e+00> : vector<8x512xf32>
    %107 = tpu.matmul %106, %104, %cst_68 {dimension_numbers = #tpu.dot_dimension_numbers<[1], [0], [0], [1], [0, 0, 1, 1], [], []>} : vector<8x8xf32>, vector<8x512xf32>, vector<8x512xf32> -> vector<8x512xf32>
    %108 = arith.addf %103, %107 : vector<8x512xf32>
    %c496_i32_69 = arith.constant 496 : i32
    %109 = tpu.dynamic_rotate %75 by %c496_i32_69 dim 1 : vector<8x512xf32>, i32 -> vector<8x512xf32>
    %c7_70 = arith.constant 7 : index
    %c0_71 = arith.constant 0 : index
    %c0_72 = arith.constant 0 : index
    %110 = vector.load %arg3[%c7_70, %c0_71, %c0_72] : memref<9x8x8xf32, #tpu.memory_space<vmem>>, vector<1x8x8xf32>
    %111 = vector.shape_cast %110 : vector<1x8x8xf32> to vector<8x8xf32>
    %cst_73 = arith.constant dense<0.000000e+00> : vector<8x512xf32>
    %112 = tpu.matmul %111, %109, %cst_73 {dimension_numbers = #tpu.dot_dimension_numbers<[1], [0], [0], [1], [0, 0, 1, 1], [], []>} : vector<8x8xf32>, vector<8x512xf32>, vector<8x512xf32> -> vector<8x512xf32>
    %113 = arith.addf %108, %112 : vector<8x512xf32>
    %c495_i32_74 = arith.constant 495 : i32
    %114 = tpu.dynamic_rotate %75 by %c495_i32_74 dim 1 : vector<8x512xf32>, i32 -> vector<8x512xf32>
    %c8_75 = arith.constant 8 : index
    %c0_76 = arith.constant 0 : index
    %c0_77 = arith.constant 0 : index
    %115 = vector.load %arg3[%c8_75, %c0_76, %c0_77] : memref<9x8x8xf32, #tpu.memory_space<vmem>>, vector<1x8x8xf32>
    %116 = vector.shape_cast %115 : vector<1x8x8xf32> to vector<8x8xf32>
    %cst_78 = arith.constant dense<0.000000e+00> : vector<8x512xf32>
    %117 = tpu.matmul %116, %114, %cst_78 {dimension_numbers = #tpu.dot_dimension_numbers<[1], [0], [0], [1], [0, 0, 1, 1], [], []>} : vector<8x8xf32>, vector<8x512xf32>, vector<8x512xf32> -> vector<8x512xf32>
    %118 = arith.addf %113, %117 : vector<8x512xf32>
    %c0_79 = arith.constant 0 : index
    %c2_80 = arith.constant 2 : index
    %119 = vector.load %arg4[%c0_79, %c2_80] : memref<8x4xf32, #tpu.memory_space<vmem>>, vector<8x1xf32>
    %c0_81 = arith.constant 0 : index
    %c3_82 = arith.constant 3 : index
    %120 = vector.load %arg4[%c0_81, %c3_82] : memref<8x4xf32, #tpu.memory_space<vmem>>, vector<8x1xf32>
    %121 = vector.broadcast %0 : vector<1x512xf32> to vector<8x512xf32>
    %122 = arith.mulf %118, %121 : vector<8x512xf32>
    %cst_83 = arith.constant dense<0.000000e+00> : vector<8xf32>
    %123 = vector.multi_reduction <add>, %122, %cst_83 [1] : vector<8x512xf32> to vector<8xf32>
    %124 = vector.shape_cast %123 : vector<8xf32> to vector<8x1xf32>
    %cst_84 = arith.constant 0.00255102036 : f32
    %125 = vector.broadcast %cst_84 : f32 to vector<8x1xf32>
    %126 = arith.mulf %124, %125 : vector<8x1xf32>
    %127 = vector.broadcast %126 : vector<8x1xf32> to vector<8x512xf32>
    %128 = arith.subf %118, %127 : vector<8x512xf32>
    %129 = vector.broadcast %0 : vector<1x512xf32> to vector<8x512xf32>
    %130 = arith.mulf %128, %129 : vector<8x512xf32>
    %131 = arith.mulf %130, %130 : vector<8x512xf32>
    %cst_85 = arith.constant dense<0.000000e+00> : vector<8xf32>
    %132 = vector.multi_reduction <add>, %131, %cst_85 [1] : vector<8x512xf32> to vector<8xf32>
    %133 = vector.shape_cast %132 : vector<8xf32> to vector<8x1xf32>
    %cst_86 = arith.constant 0.00255102036 : f32
    %134 = vector.broadcast %cst_86 : f32 to vector<8x1xf32>
    %135 = arith.mulf %133, %134 : vector<8x1xf32>
    %cst_87 = arith.constant 9.99999974E-6 : f32
    %136 = vector.broadcast %cst_87 : f32 to vector<8x1xf32>
    %137 = arith.addf %135, %136 : vector<8x1xf32>
    %138 = math.rsqrt %137 : vector<8x1xf32>
    %139 = arith.mulf %119, %138 : vector<8x1xf32>
    %140 = arith.mulf %126, %139 : vector<8x1xf32>
    %141 = arith.subf %120, %140 : vector<8x1xf32>
    %142 = vector.broadcast %139 : vector<8x1xf32> to vector<8x512xf32>
    %143 = arith.mulf %118, %142 : vector<8x512xf32>
    %144 = vector.broadcast %141 : vector<8x1xf32> to vector<8x512xf32>
    %145 = arith.addf %143, %144 : vector<8x512xf32>
    %cst_88 = arith.constant 0.000000e+00 : f32
    %146 = vector.broadcast %cst_88 : f32 to vector<8x512xf32>
    %147 = arith.maximumf %145, %146 : vector<8x512xf32>
    %c0_89 = arith.constant 0 : index
    %c0_90 = arith.constant 0 : index
    %148 = vector.load %arg6[%c0_89, %c0_90] : memref<8x512xf32, #tpu.memory_space<vmem>>, vector<8x512xf32>
    tpu.vector_store %arg6[%c0_89, %c0_90], %147 {strides = array<i32>} : memref<8x512xf32, #tpu.memory_space<vmem>>, vector<8x512xf32>,
    return
  }
  func.func @transform_0(%arg0: i32) -> (i32, i32) {
    %c0_i32 = arith.constant 0 : i32
    %c0_i32_0 = arith.constant 0 : i32
    %c0_i32_1 = arith.constant 0 : i32
    return %c0_i32, %c0_i32_0 : i32, i32
  }
  func.func @transform_1(%arg0: i32) -> (i32, i32, i32) {
    %c0_i32 = arith.constant 0 : i32
    %c0_i32_0 = arith.constant 0 : i32
    %c0_i32_1 = arith.constant 0 : i32
    %c0_i32_2 = arith.constant 0 : i32
    return %c0_i32, %c0_i32_0, %c0_i32_1 : i32, i32, i32
  }
  func.func @transform_2(%arg0: i32) -> (i32, i32, i32) {
    %c0_i32 = arith.constant 0 : i32
    %c0_i32_0 = arith.constant 0 : i32
    %c0_i32_1 = arith.constant 0 : i32
    %c0_i32_2 = arith.constant 0 : i32
    return %c0_i32, %c0_i32_0, %c0_i32_1 : i32, i32, i32
  }
  func.func @transform_3(%arg0: i32) -> (i32, i32) {
    %c0_i32 = arith.constant 0 : i32
    %c0_i32_0 = arith.constant 0 : i32
    %c0_i32_1 = arith.constant 0 : i32
    return %c0_i32, %c0_i32_0 : i32, i32
  }
  func.func @transform_4(%arg0: i32) -> (i32, i32) {
    %c0_i32 = arith.constant 0 : i32
    %c0_i32_0 = arith.constant 0 : i32
    %c0_i32_1 = arith.constant 0 : i32
    return %c0_i32, %c0_i32_0 : i32, i32
  }
  func.func @transform_5(%arg0: i32) -> (i32, i32) {
    %c0_i32 = arith.constant 0 : i32
    %c0_i32_0 = arith.constant 0 : i32
    %c0_i32_1 = arith.constant 0 : i32
    return %c0_i32, %c0_i32_0 : i32, i32
  }
}

</mosaic_0001>

<bundles_post_ra>
// kernel: double_conv.1
= control target key start
LH: loop header
LB: loop body
LE: loop exit
PB: predicated region body
PF: predicated region fallthrough
CT: control target
= control target key end

     0   :  { %v3163_v2 = vmov 0.0   ;;  %s3164_s22 = smov 127   ;;  %s3165_s27 = smov 126   ;;  %v34_v5 = vlaneseq  ;;  %vm43_vm1 = vcmask 64512   ;;  %s3621_s0 = inlined_call_operand.vmem [shape: f32[8,512], index: 0, kind: input, shape index: {}]   ;;  %s3622_s1 = inlined_call_operand.vmem [shape: f32[9,8,8], index: 1, kind: input, shape index: {}]   ;;  %s3623_s4 = inlined_call_operand.vmem [shape: f32[1,512], index: 4, kind: input, shape index: {}]   ;;  %s3624_s3 = inlined_call_operand.vmem [shape: f32[8,4], index: 3, kind: input, shape index: {}]   ;;  %s3625_s2 = inlined_call_operand.vmem [shape: f32[9,8,8], index: 2, kind: input, shape index: {}]   ;;  %s3626_s5 = inlined_call_operand.vmem [shape: f32[8,512], index: 5, kind: output, shape index: {}]  }
   0x1   :  { %v3214_v0 = vld [vmem:[%s3621_s0 + $0x8] sm:$0xff]  ;;  %v3219_v1 = vld [vmem:[%s3621_s0] sm:$0xff]  ;;  %111 = vmatprep.mubr.f32.mxu0 %v3163_v2  ;;  %182 = vmatprep.mubr.f32.mxu1 %v3163_v2  ;;  %v3230_v3 = vld [vmem:[%s3621_s0 + $0x10] sm:$0xff]  ;;  %s3166_s28 = smov 112   ;;  %s3168_s29 = smov 110  }
   0x2   :  { %28 = vrot.lane.b32.xlu0 %v3214_v0, %s3164_s22  ;;  %26 = vrot.lane.b32.xlu1 %v3219_v1, %s3164_s22  ;;  %v3235_v4 = vld [vmem:[%s3621_s0 + $0x18] sm:$0xff]  ;;  %s3167_s0 = smov 111   ;;  %s3169_s30 = smov 96   ;;  %v3278_v6 = vand.u32 127, %v34_v5  ;;  %v3085_v14 = vld [vmem:[%s3622_s1 + $0x8] sm:$0xff] }
   0x3   :  { %s3170_s6 = smov 95   ;;  %s3171_s7 = smov 94   ;;  %v25_v19 = vld [vmem:[%s3622_s1] sm:$0xff]  ;;  %v3090_v25 = vld [vmem:[%s3622_s1 + $0x10] sm:$0xff]  ;;  %v3093_v31 = vld [vmem:[%s3622_s1 + $0x18] sm:$0xff] }
   0x4   :  { %vm36_vm0 = vcmp.lt.s32.totalorder %v3278_v6, 127  ;;  %vm342_vm2 = vcmp.lt.s32.totalorder %v3278_v6, 126  ;;  %vm506_vm3 = vcmp.lt.s32.totalorder %v3278_v6, 112  ;;  %vm670_vm4 = vcmp.lt.s32.totalorder %v3278_v6, 111  ;;  %v3096_v40 = vld [vmem:[%s3622_s1 + $0x20] sm:$0xff]  ;;  %v3099_v49 = vld [vmem:[%s3622_s1 + $0x28] sm:$0xff] }
   0x5   :  { %vm834_vm5 = vcmp.lt.s32.totalorder %v3278_v6, 110  ;;  %vm998_vm6 = vcmp.lt.s32.totalorder %v3278_v6, 96  ;;  %v3102_v58 = vld [vmem:[%s3622_s1 + $0x30] sm:$0xff]  ;;  %vm1162_vm7 = vcmp.lt.s32.totalorder %v3278_v6, 95  ;;  %vm1326_vm8 = vcmp.lt.s32.totalorder %v3278_v6, 94  ;;  %s3178_s8 = smov 113  }
   0x6   :  { %30 = vrot.lane.b32.xlu0 %v3230_v3, %s3164_s22  ;;  %32 = vrot.lane.b32.xlu1 %v3235_v4, %s3164_s22  ;;  %vm1589_vm9 = vcmp.lt.s32.totalorder %v3278_v6, 16  ;;  %vm1575_vm10 = vcmp.lt.s32.totalorder %v3278_v6, 17  ;;  %vm1894_vm11 = vcmp.lt.s32.totalorder %v3278_v6, 15  ;;  %vm2058_vm12 = vcmp.lt.s32.totalorder %v3278_v6, 1 }
   0x7   :  { %vm2536_vm13 = vcmp.lt.s32.totalorder %v3278_v6, 113 }
   0xa   :  { %336 = vrot.lane.b32.xlu0 %v3214_v0, %s3165_s27  ;;  %338 = vrot.lane.b32.xlu1 %v3230_v3, %s3165_s27 }
   0xe   :  { %334 = vrot.lane.b32.xlu0 %v3219_v1, %s3165_s27  ;;  %340 = vrot.lane.b32.xlu1 %v3235_v4, %s3165_s27 }
  0x12   :  { %500 = vrot.lane.b32.xlu0 %v3214_v0, %s3166_s28  ;;  %502 = vrot.lane.b32.xlu1 %v3230_v3, %s3166_s28 }
  0x16   :  { %498 = vrot.lane.b32.xlu0 %v3219_v1, %s3166_s28  ;;  %504 = vrot.lane.b32.xlu1 %v3235_v4, %s3166_s28 }
  0x1a   :  { %664 = vrot.lane.b32.xlu0 %v3214_v0, %s3167_s0  ;;  %666 = vrot.lane.b32.xlu1 %v3230_v3, %s3167_s0 }
  0x1e   :  { %662 = vrot.lane.b32.xlu0 %v3219_v1, %s3167_s0  ;;  %668 = vrot.lane.b32.xlu1 %v3235_v4, %s3167_s0 }
  0x22   :  { %828 = vrot.lane.b32.xlu0 %v3214_v0, %s3168_s29  ;;  %830 = vrot.lane.b32.xlu1 %v3230_v3, %s3168_s29 }
  0x26   :  { %826 = vrot.lane.b32.xlu0 %v3219_v1, %s3168_s29  ;;  %832 = vrot.lane.b32.xlu1 %v3235_v4, %s3168_s29 }
  0x2a   :  { %992 = vrot.lane.b32.xlu0 %v3214_v0, %s3169_s30  ;;  %994 = vrot.lane.b32.xlu1 %v3230_v3, %s3169_s30 }
  0x2e   :  { %990 = vrot.lane.b32.xlu0 %v3219_v1, %s3169_s30  ;;  %996 = vrot.lane.b32.xlu1 %v3235_v4, %s3169_s30  ;;  %s3174_s30 = smov 1  }
  0x32   :  { %1156 = vrot.lane.b32.xlu0 %v3214_v0, %s3170_s6  ;;  %1158 = vrot.lane.b32.xlu1 %v3230_v3, %s3170_s6 }
  0x36   :  { %1154 = vrot.lane.b32.xlu0 %v3219_v1, %s3170_s6  ;;  %1160 = vrot.lane.b32.xlu1 %v3235_v4, %s3170_s6  ;;  %s3176_s6 = smov 17  }
  0x3a   :  { %1320 = vrot.lane.b32.xlu0 %v3214_v0, %s3171_s7  ;;  %1322 = vrot.lane.b32.xlu1 %v3230_v3, %s3171_s7 }
  0x3e   :  { %1318 = vrot.lane.b32.xlu0 %v3219_v1, %s3171_s7  ;;  %1324 = vrot.lane.b32.xlu1 %v3235_v4, %s3171_s7  ;;  %s3177_s7 = smov 15  }
  0x74   :  { %v29_v7 = vpop.permute.xlu0 %28  ;;  %v27_v8 = vpop.permute.xlu1 %26 }
  0x75   :  { %v39_v15 = vsel %vm36_vm0, %v27_v8, %v29_v7 }
  0x78   :  { %v31_v9 = vpop.permute.xlu0 %30  ;;  %v33_v10 = vpop.permute.xlu1 %32 }
  0x79   :  { %v38_v11 = vsel %vm36_vm0, %v29_v7, %v31_v9  ;;  %v40_v12 = vsel %vm36_vm0, %v33_v10, %v27_v8  ;;  %v37_v13 = vsel %vm36_vm0, %v31_v9, %v33_v10 }
  0x7a   :  { %77 = vmatprep.subr.mxu0 %v38_v11  ;;  %148 = vmatprep.subr.mxu1 %v40_v12 }
  0x7b   :  { %78 = vmatpush1.msra.mxu0 %v39_v15  ;;  %149 = vmatpush1.msra.mxu1 %v37_v13  ;;  %v3108_v15 = vld [vmem:[%s3622_s1 + $0x40] sm:$0xff] }
  0x7c   :  { %v337_v16 = vpop.permute.xlu0 %336  ;;  %222 = vmatprep.subr.mxu0 %v3214_v0  ;;  %v339_v17 = vpop.permute.xlu1 %338  ;;  %3086 = vmatmul.mubr.msk.f32.vlgmr.msra.gmra.mxu0 %vm43_vm1, %v3085_v14 }
  0x7d   :  { %223 = vmatpush1.msra.mxu0 %v3219_v1  ;;  %v344_v18 = vsel %vm342_vm2, %v337_v16, %v339_v17  ;;  %3087 = vmatmul.mubr.msk.f32.vlgmr.msra.gmra.mxu1 %vm43_vm1, %v3085_v14 }
  0x7e   :  { %382 = vmatprep.subr.mxu0 %v344_v18  ;;  %293 = vmatprep.subr.mxu1 %v3235_v4  ;;  %v3105_v4 = vld [vmem:[%s3622_s1 + $0x38] sm:$0xff] }
  0x7f   :  { %256 = vmatprep.mubr.f32.mxu0 %v3163_v2  ;;  %294 = vmatpush1.msra.mxu1 %v3230_v3 }
  0x80   :  { %v335_v20 = vpop.permute.xlu0 %334  ;;  %v341_v21 = vpop.permute.xlu1 %340  ;;  %3088 = vmatmul.mubr.msk.f32.vlgmr.msra.gmra.mxu0 %vm43_vm1, %v25_v19  ;;  %327 = vmatprep.mubr.f32.mxu1 %v3163_v2 }
  0x81   :  { %v345_v22 = vsel %vm342_vm2, %v335_v20, %v337_v16  ;;  %v343_v23 = vsel %vm342_vm2, %v339_v17, %v341_v21  ;;  %v346_v24 = vsel %vm342_vm2, %v341_v21, %v335_v20  ;;  %3089 = vmatmul.mubr.msk.f32.vlgmr.msra.gmra.mxu1 %vm43_vm1, %v25_v19  ;;  %416 = vmatprep.mubr.f32.mxu0 %v3163_v2 }
  0x82   :  { %383 = vmatpush1.msra.mxu0 %v345_v22  ;;  %453 = vmatprep.subr.mxu1 %v346_v24 }
  0x83   :  { %454 = vmatpush1.msra.mxu1 %v343_v23  ;;  %487 = vmatprep.mubr.f32.mxu1 %v3163_v2 }
  0x84   :  { %v501_v26 = vpop.permute.xlu0 %500  ;;  %v503_v27 = vpop.permute.xlu1 %502  ;;  %3091 = vmatmul.mubr.msk.f32.vlgmr.msra.gmra.mxu0 %vm43_vm1, %v3090_v25 }
  0x85   :  { %v508_v28 = vsel %vm506_vm3, %v501_v26, %v503_v27  ;;  %3092 = vmatmul.mubr.msk.f32.vlgmr.msra.gmra.mxu1 %vm43_vm1, %v3090_v25  ;;  %580 = vmatprep.mubr.f32.mxu0 %v3163_v2 }
  0x86   :  { %546 = vmatprep.subr.mxu0 %v508_v28  ;;  %651 = vmatprep.mubr.f32.mxu1 %v3163_v2 }
  0x88   :  { %v499_v29 = vpop.permute.xlu0 %498  ;;  %v505_v30 = vpop.permute.xlu1 %504 }
  0x89   :  { %v509_v32 = vsel %vm506_vm3, %v499_v29, %v501_v26  ;;  %v507_v33 = vsel %vm506_vm3, %v503_v27, %v505_v30  ;;  %v510_v34 = vsel %vm506_vm3, %v505_v30, %v499_v29 }
  0x8a   :  { %547 = vmatpush1.msra.mxu0 %v509_v32  ;;  %617 = vmatprep.subr.mxu1 %v510_v34 }
  0x8b   :  { %618 = vmatpush1.msra.mxu1 %v507_v33  ;;  %3094 = vmatmul.mubr.msk.f32.vlgmr.msra.gmra.mxu0 %vm43_vm1, %v3093_v31 }
  0x8c   :  { %v665_v35 = vpop.permute.xlu0 %664  ;;  %v667_v36 = vpop.permute.xlu1 %666  ;;  %3095 = vmatmul.mubr.msk.f32.vlgmr.msra.gmra.mxu1 %vm43_vm1, %v3093_v31  ;;  %744 = vmatprep.mubr.f32.mxu0 %v3163_v2 }
  0x8d   :  { %v672_v37 = vsel %vm670_vm4, %v665_v35, %v667_v36  ;;  %815 = vmatprep.mubr.f32.mxu1 %v3163_v2 }
  0x8e   :  { %710 = vmatprep.subr.mxu0 %v672_v37 }
  0x90   :  { %v663_v38 = vpop.permute.xlu0 %662  ;;  %v669_v39 = vpop.permute.xlu1 %668 }
  0x91   :  { %v673_v41 = vsel %vm670_vm4, %v663_v38, %v665_v35  ;;  %v671_v42 = vsel %vm670_vm4, %v667_v36, %v669_v39  ;;  %v674_v43 = vsel %vm670_vm4, %v669_v39, %v663_v38 }
  0x92   :  { %711 = vmatpush1.msra.mxu0 %v673_v41  ;;  %781 = vmatprep.subr.mxu1 %v674_v43 }
  0x93   :  { %782 = vmatpush1.msra.mxu1 %v671_v42  ;;  %3097 = vmatmul.mubr.msk.f32.vlgmr.msra.gmra.mxu0 %vm43_vm1, %v3096_v40 }
  0x94   :  { %v829_v44 = vpop.permute.xlu0 %828  ;;  %v831_v45 = vpop.permute.xlu1 %830  ;;  %3098 = vmatmul.mubr.msk.f32.vlgmr.msra.gmra.mxu1 %vm43_vm1, %v3096_v40  ;;  %908 = vmatprep.mubr.f32.mxu0 %v3163_v2 }
  0x95   :  { %v836_v46 = vsel %vm834_vm5, %v829_v44, %v831_v45  ;;  %979 = vmatprep.mubr.f32.mxu1 %v3163_v2 }
  0x96   :  { %874 = vmatprep.subr.mxu0 %v836_v46 }
  0x98   :  { %v827_v47 = vpop.permute.xlu0 %826  ;;  %v833_v48 = vpop.permute.xlu1 %832 }
  0x99   :  { %v837_v50 = vsel %vm834_vm5, %v827_v47, %v829_v44  ;;  %v835_v51 = vsel %vm834_vm5, %v831_v45, %v833_v48  ;;  %v838_v52 = vsel %vm834_vm5, %v833_v48, %v827_v47 }
  0x9a   :  { %875 = vmatpush1.msra.mxu0 %v837_v50  ;;  %945 = vmatprep.subr.mxu1 %v838_v52 }
  0x9b   :  { %3100 = vmatmul.mubr.msk.f32.vlgmr.msra.gmra.mxu0 %vm43_vm1, %v3099_v49  ;;  %946 = vmatpush1.msra.mxu1 %v835_v51 }
  0x9c   :  { %v993_v53 = vpop.permute.xlu0 %992  ;;  %v995_v54 = vpop.permute.xlu1 %994  ;;  %3101 = vmatmul.mubr.msk.f32.vlgmr.msra.gmra.mxu1 %vm43_vm1, %v3099_v49  ;;  %1072 = vmatprep.mubr.f32.mxu0 %v3163_v2 }
  0x9d   :  { %v1000_v55 = vsel %vm998_vm6, %v993_v53, %v995_v54  ;;  %1143 = vmatprep.mubr.f32.mxu1 %v3163_v2 }
  0x9e   :  { %1038 = vmatprep.subr.mxu0 %v1000_v55 }
  0xa0   :  { %v991_v56 = vpop.permute.xlu0 %990  ;;  %v997_v57 = vpop.permute.xlu1 %996 }
  0xa1   :  { %v1001_v59 = vsel %vm998_vm6, %v991_v56, %v993_v53  ;;  %v999_v60 = vsel %vm998_vm6, %v995_v54, %v997_v57  ;;  %v1002_v61 = vsel %vm998_vm6, %v997_v57, %v991_v56 }
  0xa2   :  { %1039 = vmatpush1.msra.mxu0 %v1001_v59  ;;  %1109 = vmatprep.subr.mxu1 %v1002_v61  ;;  %v1485_v59 = vshrl.u32 %v34_v5, 7 }
  0xa3   :  { %3103 = vmatmul.mubr.msk.f32.vlgmr.msra.gmra.mxu0 %vm43_vm1, %v3102_v58  ;;  %1110 = vmatpush1.msra.mxu1 %v999_v60 }
  0xa4   :  { %v1157_v62 = vpop.permute.xlu0 %1156  ;;  %3104 = vmatmul.mubr.msk.f32.vlgmr.msra.gmra.mxu1 %vm43_vm1, %v3102_v58  ;;  %v1159_v63 = vpop.permute.xlu1 %1158  ;;  %1236 = vmatprep.mubr.f32.mxu0 %v3163_v2 }
  0xa5   :  { %v1164_v0 = vsel %vm1162_vm7, %v1157_v62, %v1159_v63  ;;  %1307 = vmatprep.mubr.f32.mxu1 %v3163_v2 }
  0xa6   :  { %1202 = vmatprep.subr.mxu0 %v1164_v0 }
  0xa8   :  { %v1155_v1 = vpop.permute.xlu0 %1154  ;;  %v1161_v3 = vpop.permute.xlu1 %1160 }
  0xa9   :  { %v1165_v7 = vsel %vm1162_vm7, %v1155_v1, %v1157_v62  ;;  %v1163_v8 = vsel %vm1162_vm7, %v1159_v63, %v1161_v3  ;;  %v1166_v9 = vsel %vm1162_vm7, %v1161_v3, %v1155_v1 }
  0xaa   :  { %1203 = vmatpush1.msra.mxu0 %v1165_v7  ;;  %1273 = vmatprep.subr.mxu1 %v1166_v9  ;;  %v1490_v7 = vsub.s32 1, %v1485_v59 }
  0xab   :  { %3106 = vmatmul.mubr.msk.f32.vlgmr.msra.gmra.mxu0 %vm43_vm1, %v3105_v4  ;;  %1274 = vmatpush1.msra.mxu1 %v1163_v8 }
  0xac   :  { %v1321_v10 = vpop.permute.xlu0 %1320  ;;  %3107 = vmatmul.mubr.msk.f32.vlgmr.msra.gmra.mxu1 %vm43_vm1, %v3105_v4  ;;  %v1323_v11 = vpop.permute.xlu1 %1322  ;;  %1400 = vmatprep.mubr.f32.mxu0 %v3163_v2  ;;  %v1486_v4 = vsub.s32 0, %v1485_v59 }
  0xad   :  { %v1328_v12 = vsel %vm1326_vm8, %v1321_v10, %v1323_v11  ;;  %1471 = vmatprep.mubr.f32.mxu1 %v3163_v2 }
  0xae   :  { %1366 = vmatprep.subr.mxu0 %v1328_v12 }
  0xb0   :  { %v1319_v13 = vpop.permute.xlu0 %1318  ;;  %v1325_v14 = vpop.permute.xlu1 %1324 }
  0xb1   :  { %v1329_v16 = vsel %vm1326_vm8, %v1319_v13, %v1321_v10  ;;  %v1327_v17 = vsel %vm1326_vm8, %v1323_v11, %v1325_v14  ;;  %v1330_v18 = vsel %vm1326_vm8, %v1325_v14, %v1319_v13  ;;  %v20_v11 = vld [vmem:[%s3623_s4] sm:$0xf]  ;;  %v1494_v13 = vsub.s32 2, %v1485_v59 }
  0xb2   :  { %1367 = vmatpush1.msra.mxu0 %v1329_v16  ;;  %1437 = vmatprep.subr.mxu1 %v1330_v18 }
  0xb3   :  { %3109 = vmatmul.mubr.msk.f32.vlgmr.msra.gmra.mxu0 %vm43_vm1, %v3108_v15  ;;  %1438 = vmatpush1.msra.mxu1 %v1327_v17 }
  0xb4   :  { %3110 = vmatmul.mubr.msk.f32.vlgmr.msra.gmra.mxu1 %vm43_vm1, %v3108_v15  ;;  %1663 = vmatprep.mubr.f32.mxu0 %v3163_v2 }
  0xb5   :  { %1734 = vmatprep.mubr.f32.mxu1 %v3163_v2 }
 0x13c   :  { %v113_v19 = vpop.f32.mrf.mxu0 }
 0x13d   :  { %v184_v20 = vpop.f32.mrf.mxu1 }
 0x13e   :  { %v115_v21 = vpop.f32.mrf.mxu0 }
 0x13f   :  { %v186_v22 = vpop.f32.mrf.mxu1 }
 0x140   :  { %v258_v23 = vpop.f32.mrf.mxu0 }
 0x141   :  { %v329_v24 = vpop.f32.mrf.mxu1  ;;  %v259_v38 = vadd.f32 %v258_v23, %v113_v19  ;;  %v3391_v19 = vrot.slane %v20_v11, %v1486_v4 }
 0x142   :  { %v260_v25 = vpop.f32.mrf.mxu0  ;;  %v330_v40 = vadd.f32 %v329_v24, %v184_v20  ;;  %v3393_v20 = vrot.slane %v20_v11, %v1490_v7 }
 0x143   :  { %v331_v26 = vpop.f32.mrf.mxu1  ;;  %v261_v42 = vadd.f32 %v260_v25, %v115_v21  ;;  %v1498_v21 = vsub.s32 3, %v1485_v59  ;;  %v3172_v59 = vmov 0  }
 0x144   :  { %v418_v27 = vpop.f32.mrf.mxu0  ;;  %v332_v43 = vadd.f32 %v331_v26, %v186_v22  ;;  %3155 = vset.pattern.permute.xlu1 %v3172_v59 }
 0x145   :  { %v489_v28 = vpop.f32.mrf.mxu1  ;;  %v494_v44 = vadd.f32 %v418_v27, %v259_v38 }
 0x146   :  { %v420_v29 = vpop.f32.mrf.mxu0  ;;  %v496_v46 = vadd.f32 %v489_v28, %v330_v40 }
 0x147   :  { %v491_v30 = vpop.f32.mrf.mxu1  ;;  %v495_v48 = vadd.f32 %v420_v29, %v261_v42 }
 0x148   :  { %v497_v49 = vadd.f32 %v491_v30, %v332_v43  ;;  %v3397_v30 = vrot.slane %v20_v11, %v1494_v13 }
 0x14b   :  { %v582_v31 = vpop.f32.mrf.mxu0 }
 0x14c   :  { %v653_v32 = vpop.f32.mrf.mxu1  ;;  %v658_v50 = vadd.f32 %v582_v31, %v494_v44 }
 0x14d   :  { %v584_v33 = vpop.f32.mrf.mxu0  ;;  %v660_v53 = vadd.f32 %v653_v32, %v496_v46 }
 0x14e   :  { %v655_v34 = vpop.f32.mrf.mxu1  ;;  %v659_v55 = vadd.f32 %v584_v33, %v495_v48 }
 0x14f   :  { %v661_v56 = vadd.f32 %v655_v34, %v497_v49 }
 0x153   :  { %v746_v35 = vpop.f32.mrf.mxu0 }
 0x154   :  { %v817_v36 = vpop.f32.mrf.mxu1  ;;  %v822_v57 = vadd.f32 %v746_v35, %v658_v50 }
 0x155   :  { %v748_v37 = vpop.f32.mrf.mxu0  ;;  %v824_v60 = vadd.f32 %v817_v36, %v660_v53  ;;  %v3401_v36 = vrot.slane %v20_v11, %v1498_v21 }
 0x156   :  { %v819_v39 = vpop.f32.mrf.mxu1  ;;  %v823_v63 = vadd.f32 %v748_v37, %v659_v55 }
 0x157   :  { %v825_v0 = vadd.f32 %v819_v39, %v661_v56 }
 0x15b   :  { %v910_v41 = vpop.f32.mrf.mxu0 }
 0x15c   :  { %v981_v45 = vpop.f32.mrf.mxu1  ;;  %v986_v1 = vadd.f32 %v910_v41, %v822_v57 }
 0x15d   :  { %v912_v47 = vpop.f32.mrf.mxu0  ;;  %v988_v9 = vadd.f32 %v981_v45, %v824_v60 }
 0x15e   :  { %v983_v51 = vpop.f32.mrf.mxu1  ;;  %v987_v8 = vadd.f32 %v912_v47, %v823_v63  ;;  %v3173_v63 = vmov 1  }
 0x15f   :  { %v989_v14 = vadd.f32 %v983_v51, %v825_v0  ;;  %3156 = vset.pattern.permute.xlu0 %v3173_v63  ;;  %v3414_v0 = vld [vmem:[%s3624_s3] sm:$0xff]  ;;  %s3175_s3 = smov 16  }
 0x163   :  { %v1074_v52 = vpop.f32.mrf.mxu0 }
 0x164   :  { %v1145_v54 = vpop.f32.mrf.mxu1  ;;  %v1150_v10 = vadd.f32 %v1074_v52, %v986_v1 }
 0x165   :  { %v1076_v58 = vpop.f32.mrf.mxu0  ;;  %v1152_v5 = vadd.f32 %v1145_v54, %v988_v9 }
 0x166   :  { %v1147_v61 = vpop.f32.mrf.mxu1  ;;  %v1151_v15 = vadd.f32 %v1076_v58, %v987_v8 }
 0x167   :  { %v1153_v22 = vadd.f32 %v1147_v61, %v989_v14 }
 0x16b   :  { %v1238_v62 = vpop.f32.mrf.mxu0 }
 0x16c   :  { %v1309_v3 = vpop.f32.mrf.mxu1  ;;  %v1314_v16 = vadd.f32 %v1238_v62, %v1150_v10 }
 0x16d   :  { %v1240_v12 = vpop.f32.mrf.mxu0  ;;  %v1316_v23 = vadd.f32 %v1309_v3, %v1152_v5 }
 0x16e   :  { %v1311_v17 = vpop.f32.mrf.mxu1  ;;  %v1315_v24 = vadd.f32 %v1240_v12, %v1151_v15 }
 0x16f   :  { %v1317_v28 = vadd.f32 %v1311_v17, %v1153_v22 }
 0x173   :  { %v1402_v18 = vpop.f32.mrf.mxu0 }
 0x174   :  { %v1478_v25 = vadd.f32 %v1402_v18, %v1314_v16  ;;  %v1473_v26 = vpop.f32.mrf.mxu1 }
 0x175   :  { %v1404_v27 = vpop.f32.mrf.mxu0  ;;  %v3395_v29 = vadd.f32 %v1473_v26, %v1316_v23 }
 0x176   :  { %v1479_v31 = vadd.f32 %v1404_v27, %v1315_v24  ;;  %v1475_v32 = vpop.f32.mrf.mxu1  ;;  %v1504_v33 = vmul.f32 %v3391_v19, %v1478_v25 }
 0x177   :  { %v1481_v35 = vadd.f32 %v1475_v32, %v1317_v28  ;;  %v1506_v37 = vmul.f32 %v3397_v30, %v3395_v29 }
 0x178   :  { %v1505_v34 = vmul.f32 %v3393_v20, %v1479_v31 }
 0x179   :  { %v1507_v39 = vmul.f32 %v3401_v36, %v1481_v35 }
 0x17a   :  { %v1508_v38 = vadd.f32 %v1505_v34, %v1504_v33  ;;  %v3111_v34 = vld [vmem:[%s3625_s2 + $0x8] sm:$0xff] }
 0x17c   :  { %v1509_v40 = vadd.f32 %v1508_v38, %v1506_v37 }
 0x17e   :  { %v1510_v41 = vadd.f32 %v1509_v40, %v1507_v39 }
 0x180   :  { %1511 = vadd.xlane.f32.xlu0 %v1510_v41  ;;  %v1580_v41 = vld [vmem:[%s3625_s2] sm:$0xff] }
 0x209   :  { %v1512_v42 = vpop.xlane.xlu0 %1511 }
 0x20a   :  { %v1513_v43 = vmul.f32 0.0025510204, %v1512_v42 }
 0x20c   :  { %v1514_v44 = vsub.f32 %v1478_v25, %v1513_v43  ;;  %v1515_v45 = vsub.f32 %v1479_v31, %v1513_v43  ;;  %v1516_v46 = vsub.f32 %v3395_v29, %v1513_v43  ;;  %v1517_v47 = vsub.f32 %v1481_v35, %v1513_v43 }
 0x20e   :  { %v1518_v48 = vmul.f32 %v1514_v44, %v3391_v19  ;;  %v1519_v49 = vmul.f32 %v1515_v45, %v3393_v20  ;;  %v1520_v50 = vmul.f32 %v1516_v46, %v3397_v30  ;;  %v1521_v51 = vmul.f32 %v1517_v47, %v3401_v36 }
 0x210   :  { %v1522_v52 = vmul.f32 %v1518_v48, %v1518_v48  ;;  %v1523_v53 = vmul.f32 %v1519_v49, %v1519_v49  ;;  %v1524_v54 = vmul.f32 %v1520_v50, %v1520_v50  ;;  %v1525_v56 = vmul.f32 %v1521_v51, %v1521_v51 }
 0x212   :  { %v1526_v55 = vadd.f32 %v1523_v53, %v1522_v52  ;;  %v3116_v53 = vld [vmem:[%s3625_s2 + $0x10] sm:$0xff] }
 0x214   :  { %v1527_v57 = vadd.f32 %v1526_v55, %v1524_v54 }
 0x216   :  { %v1528_v58 = vadd.f32 %v1527_v57, %v1525_v56 }
 0x218   :  { %1529 = vadd.xlane.f32.xlu1 %v1528_v58 }
 0x2a1   :  { %v1530_v60 = vpop.xlane.xlu1 %1529 }
 0x2a2   :  { %v1531_v61 = vmul.f32 0.0025510204, %v1530_v60 }
 0x2a4   :  { %v1532_v62 = vadd.f32 1e-05, %v1531_v61 }
 0x2a6   :  { %3159 = vrsqrt.f32 %v1532_v62  ;;  %v3119_v62 = vld [vmem:[%s3625_s2 + $0x18] sm:$0xff] }
 0x2b3   :  { %v3160_v1 = vpop.eup %3159 }
 0x2b4   :  { %v1534_v3 = vmul.f32 %v3160_v1, %v3414_v0 }
 0x2b6   :  { %1543 = vperm.xlu1 %3155, %v1534_v3   ;;  %v1535_v4 = vmul.f32 %v1534_v3, %v1513_v43 }
 0x2b8   :  { %1537 = vrot.lane.b32.xlu0 %v1535_v4, %s3174_s30 }
 0x32a   :  { %v1538_v7 = vpop.permute.xlu0 %1537 }
 0x32b   :  { %v1540_v8 = vsub.f32 %v3414_v0, %v1538_v7 }
 0x32d   :  { %1552 = vperm.xlu0 %3156, %v1540_v8   ;;  %v3122_v8 = vld [vmem:[%s3625_s2 + $0x20] sm:$0xff] }
 0x331   :  { %v1544_v9 = vpop.permute.xlu1 %1543 }
 0x332   :  { %v1546_v10 = vmul.f32 %v1544_v9, %v1478_v25  ;;  %v1547_v11 = vmul.f32 %v1544_v9, %v1479_v31  ;;  %v1549_v12 = vmul.f32 %v1544_v9, %v1481_v35  ;;  %v1548_v23 = vmul.f32 %v1544_v9, %v3395_v29 }
 0x3a8   :  { %v1553_v13 = vpop.permute.xlu0 %1552 }
 0x3a9   :  { %v1555_v14 = vadd.f32 %v1553_v13, %v1546_v10  ;;  %v1556_v5 = vadd.f32 %v1553_v13, %v1547_v11  ;;  %v1558_v15 = vadd.f32 %v1553_v13, %v1549_v12  ;;  %v1557_v24 = vadd.f32 %v1553_v13, %v1548_v23  ;;  %v3125_v13 = vld [vmem:[%s3625_s2 + $0x28] sm:$0xff] }
 0x3ab   :  { %v1559_v16 = vmax.f32 %v1555_v14, 0.0  ;;  %v1562_v17 = vmax.f32 %v1558_v15, 0.0  ;;  %v1560_v18 = vmax.f32 %v1556_v5, 0.0  ;;  %v1561_v26 = vmax.f32 %v1557_v24, 0.0 }
 0x3ad   :  { %v3420_v21 = vmul.f32 %v1559_v16, %v3391_v19  ;;  %v3423_v22 = vmul.f32 %v1562_v17, %v3401_v36  ;;  %v3429_v25 = vmul.f32 %v1560_v18, %v3393_v20  ;;  %v3436_v27 = vmul.f32 %v1561_v26, %v3397_v30 }
 0x3af   :  { %1587 = vrot.lane.b32.xlu0 %v3423_v22, %s3175_s3  ;;  %1581 = vrot.lane.b32.xlu1 %v3420_v21, %s3175_s3 }
 0x3b3   :  { %1569 = vrot.lane.b32.xlu0 %v3429_v25, %s3176_s6  ;;  %1583 = vrot.lane.b32.xlu1 %v3429_v25, %s3175_s3 }
 0x3b7   :  { %1573 = vrot.lane.b32.xlu0 %v3423_v22, %s3176_s6  ;;  %1567 = vrot.lane.b32.xlu1 %v3420_v21, %s3176_s6 }
 0x3bb   :  { %1886 = vrot.lane.b32.xlu0 %v3420_v21, %s3177_s7  ;;  %1585 = vrot.lane.b32.xlu1 %v3436_v27, %s3175_s3 }
 0x3bf   :  { %1892 = vrot.lane.b32.xlu0 %v3423_v22, %s3177_s7  ;;  %1571 = vrot.lane.b32.xlu1 %v3436_v27, %s3176_s6 }
 0x3c3   :  { %2050 = vrot.lane.b32.xlu0 %v3420_v21, %s3174_s30  ;;  %1888 = vrot.lane.b32.xlu1 %v3429_v25, %s3177_s7 }
 0x3c7   :  { %2056 = vrot.lane.b32.xlu0 %v3423_v22, %s3174_s30  ;;  %1890 = vrot.lane.b32.xlu1 %v3436_v27, %s3177_s7 }
 0x3cb   :  { %2367 = vrot.lane.b32.xlu0 %v3429_v25, %s3164_s22  ;;  %2052 = vrot.lane.b32.xlu1 %v3429_v25, %s3174_s30 }
 0x3cf   :  { %2365 = vrot.lane.b32.xlu0 %v3420_v21, %s3164_s22  ;;  %2054 = vrot.lane.b32.xlu1 %v3436_v27, %s3174_s30 }
 0x3d3   :  { %2530 = vrot.lane.b32.xlu0 %v3429_v25, %s3178_s8  ;;  %2369 = vrot.lane.b32.xlu1 %v3436_v27, %s3164_s22 }
 0x3d7   :  { %2528 = vrot.lane.b32.xlu0 %v3420_v21, %s3178_s8  ;;  %2371 = vrot.lane.b32.xlu1 %v3423_v22, %s3164_s22 }
 0x3db   :  { %2694 = vrot.lane.b32.xlu0 %v3429_v25, %s3166_s28  ;;  %2532 = vrot.lane.b32.xlu1 %v3436_v27, %s3178_s8 }
 0x3df   :  { %2692 = vrot.lane.b32.xlu0 %v3420_v21, %s3166_s28  ;;  %2534 = vrot.lane.b32.xlu1 %v3423_v22, %s3178_s8 }
 0x3e3   :  { %2857 = vrot.lane.b32.xlu0 %v3429_v25, %s3167_s0  ;;  %2696 = vrot.lane.b32.xlu1 %v3436_v27, %s3166_s28 }
 0x3e7   :  { %2855 = vrot.lane.b32.xlu0 %v3420_v21, %s3167_s0  ;;  %2698 = vrot.lane.b32.xlu1 %v3423_v22, %s3166_s28 }
 0x3eb   :  { %2859 = vrot.lane.b32.xlu1 %v3436_v27, %s3167_s0 }
 0x3ef   :  { %2861 = vrot.lane.b32.xlu1 %v3423_v22, %s3167_s0 }
 0x421   :  { %v1588_v28 = vpop.permute.xlu0 %1587  ;;  %v1582_v29 = vpop.permute.xlu1 %1581 }
 0x422   :  { %v1593_v35 = vsel %vm1589_vm9, %v1588_v28, %v1582_v29 }
 0x425   :  { %v1570_v31 = vpop.permute.xlu0 %1569  ;;  %v1584_v32 = vpop.permute.xlu1 %1583 }
 0x426   :  { %v1592_v33 = vsel %vm1589_vm9, %v1582_v29, %v1584_v32 }
 0x427   :  { %1629 = vmatprep.subr.mxu0 %v1592_v33 }
 0x428   :  { %1630 = vmatpush1.msra.mxu0 %v1593_v35 }
 0x429   :  { %v1574_v37 = vpop.permute.xlu0 %1573  ;;  %v1568_v38 = vpop.permute.xlu1 %1567  ;;  %3112 = vmatmul.mubr.msk.f32.vlgmr.msra.gmra.mxu0 %vm43_vm1, %v3111_v34 }
 0x42a   :  { %v1579_v39 = vsel %vm1575_vm10, %v1574_v37, %v1568_v38  ;;  %v1578_v40 = vsel %vm1575_vm10, %v1568_v38, %v1570_v31  ;;  %1808 = vmatprep.mubr.f32.mxu0 %v3163_v2 }
 0x42b   :  { %1774 = vmatprep.subr.mxu0 %v1578_v40 }
 0x42c   :  { %1775 = vmatpush1.msra.mxu0 %v1579_v39 }
 0x42d   :  { %v1887_v42 = vpop.permute.xlu0 %1886  ;;  %v1586_v43 = vpop.permute.xlu1 %1585  ;;  %3114 = vmatmul.mubr.msk.f32.vlgmr.msra.gmra.mxu0 %vm43_vm1, %v1580_v41 }
 0x42e   :  { %v1591_v44 = vsel %vm1589_vm9, %v1584_v32, %v1586_v43  ;;  %v1590_v45 = vsel %vm1589_vm9, %v1586_v43, %v1588_v28  ;;  %1968 = vmatprep.mubr.f32.mxu0 %v3163_v2  ;;  %v3131_v32 = vld [vmem:[%s3625_s2 + $0x38] sm:$0xff] }
 0x42f   :  { %1700 = vmatprep.subr.mxu1 %v1590_v45 }
 0x430   :  { %1701 = vmatpush1.msra.mxu1 %v1591_v44 }
 0x431   :  { %v1893_v46 = vpop.permute.xlu0 %1892  ;;  %v1572_v47 = vpop.permute.xlu1 %1571  ;;  %3113 = vmatmul.mubr.msk.f32.vlgmr.msra.gmra.mxu1 %vm43_vm1, %v3111_v34 }
 0x432   :  { %v1577_v48 = vsel %vm1575_vm10, %v1570_v31, %v1572_v47  ;;  %v1576_v49 = vsel %vm1575_vm10, %v1572_v47, %v1574_v37  ;;  %1879 = vmatprep.mubr.f32.mxu1 %v3163_v2  ;;  %v1898_v54 = vsel %vm1894_vm11, %v1893_v46, %v1887_v42 }
 0x433   :  { %1845 = vmatprep.subr.mxu1 %v1576_v49 }
 0x434   :  { %1846 = vmatpush1.msra.mxu1 %v1577_v48 }
 0x435   :  { %v2051_v50 = vpop.permute.xlu0 %2050  ;;  %v1889_v51 = vpop.permute.xlu1 %1888  ;;  %3115 = vmatmul.mubr.msk.f32.vlgmr.msra.gmra.mxu1 %vm43_vm1, %v1580_v41  ;;  %v3134_v41 = vld [vmem:[%s3625_s2 + $0x40] sm:$0xff] }
 0x436   :  { %v1897_v52 = vsel %vm1894_vm11, %v1887_v42, %v1889_v51  ;;  %2039 = vmatprep.mubr.f32.mxu1 %v3163_v2 }
 0x437   :  { %1934 = vmatprep.subr.mxu0 %v1897_v52 }
 0x438   :  { %1935 = vmatpush1.msra.mxu0 %v1898_v54 }
 0x439   :  { %v2057_v55 = vpop.permute.xlu0 %2056  ;;  %v1891_v56 = vpop.permute.xlu1 %1890  ;;  %3117 = vmatmul.mubr.msk.f32.vlgmr.msra.gmra.mxu0 %vm43_vm1, %v3116_v53 }
 0x43a   :  { %v1896_v57 = vsel %vm1894_vm11, %v1889_v51, %v1891_v56  ;;  %v1895_v58 = vsel %vm1894_vm11, %v1891_v56, %v1893_v46  ;;  %2132 = vmatprep.mubr.f32.mxu0 %v3163_v2  ;;  %v2062_v63 = vsel %vm2058_vm12, %v2057_v55, %v2051_v50 }
 0x43b   :  { %2005 = vmatprep.subr.mxu1 %v1895_v58 }
 0x43c   :  { %2006 = vmatpush1.msra.mxu1 %v1896_v57 }
 0x43d   :  { %v2368_v59 = vpop.permute.xlu0 %2367  ;;  %v2053_v60 = vpop.permute.xlu1 %2052  ;;  %3118 = vmatmul.mubr.msk.f32.vlgmr.msra.gmra.mxu1 %vm43_vm1, %v3116_v53 }
 0x43e   :  { %v2061_v61 = vsel %vm2058_vm12, %v2051_v50, %v2053_v60  ;;  %2203 = vmatprep.mubr.f32.mxu1 %v3163_v2 }
 0x43f   :  { %2098 = vmatprep.subr.mxu0 %v2061_v61 }
 0x440   :  { %2099 = vmatpush1.msra.mxu0 %v2062_v63 }
 0x441   :  { %v2366_v1 = vpop.permute.xlu0 %2365  ;;  %2249 = vmatprep.subr.mxu0 %v3429_v25  ;;  %v2055_v3 = vpop.permute.xlu1 %2054  ;;  %3120 = vmatmul.mubr.msk.f32.vlgmr.msra.gmra.mxu0 %vm43_vm1, %v3119_v62 }
 0x442   :  { %v2060_v4 = vsel %vm2058_vm12, %v2053_v60, %v2055_v3  ;;  %2250 = vmatpush1.msra.mxu0 %v3420_v21  ;;  %v2059_v7 = vsel %vm2058_vm12, %v2055_v3, %v2057_v55  ;;  %2283 = vmatprep.mubr.f32.mxu0 %v3163_v2  ;;  %v2375_v12 = vsel %vm36_vm0, %v2366_v1, %v2368_v59 }
 0x443   :  { %2169 = vmatprep.subr.mxu1 %v2059_v7 }
 0x444   :  { %2170 = vmatpush1.msra.mxu1 %v2060_v4 }
 0x445   :  { %v2531_v9 = vpop.permute.xlu0 %2530  ;;  %2320 = vmatprep.subr.mxu1 %v3423_v22  ;;  %v2370_v10 = vpop.permute.xlu1 %2369  ;;  %3121 = vmatmul.mubr.msk.f32.vlgmr.msra.gmra.mxu1 %vm43_vm1, %v3119_v62  ;;  %v3128_v22 = vld [vmem:[%s3625_s2 + $0x30] sm:$0xff] }
 0x446   :  { %3123 = vmatmul.mubr.msk.f32.vlgmr.msra.gmra.mxu0 %vm43_vm1, %v3122_v8  ;;  %2321 = vmatpush1.msra.mxu1 %v3436_v27  ;;  %v2374_v11 = vsel %vm36_vm0, %v2368_v59, %v2370_v10 }
 0x447   :  { %2412 = vmatprep.subr.mxu0 %v2374_v11  ;;  %2354 = vmatprep.mubr.f32.mxu1 %v3163_v2 }
 0x448   :  { %2413 = vmatpush1.msra.mxu0 %v2375_v12  ;;  %2446 = vmatprep.mubr.f32.mxu0 %v3163_v2 }
 0x449   :  { %v2529_v14 = vpop.permute.xlu0 %2528  ;;  %v2372_v5 = vpop.permute.xlu1 %2371  ;;  %3124 = vmatmul.mubr.msk.f32.vlgmr.msra.gmra.mxu1 %vm43_vm1, %v3122_v8 }
 0x44a   :  { %v2373_v15 = vsel %vm36_vm0, %v2370_v10, %v2372_v5  ;;  %3126 = vmatmul.mubr.msk.f32.vlgmr.msra.gmra.mxu0 %vm43_vm1, %v3125_v13  ;;  %v2376_v16 = vsel %vm36_vm0, %v2372_v5, %v2366_v1  ;;  %2517 = vmatprep.mubr.f32.mxu1 %v3163_v2  ;;  %v2539_v23 = vsel %vm2536_vm13, %v2529_v14, %v2531_v9 }
 0x44b   :  { %2483 = vmatprep.subr.mxu1 %v2376_v16  ;;  %2610 = vmatprep.mubr.f32.mxu0 %v3163_v2 }
 0x44c   :  { %2484 = vmatpush1.msra.mxu1 %v2373_v15 }
 0x44d   :  { %v2695_v17 = vpop.permute.xlu0 %2694  ;;  %v2533_v18 = vpop.permute.xlu1 %2532  ;;  %3127 = vmatmul.mubr.msk.f32.vlgmr.msra.gmra.mxu1 %vm43_vm1, %v3125_v13 }
 0x44e   :  { %v2538_v21 = vsel %vm2536_vm13, %v2531_v9, %v2533_v18  ;;  %2681 = vmatprep.mubr.f32.mxu1 %v3163_v2 }
 0x44f   :  { %2576 = vmatprep.subr.mxu0 %v2538_v21 }
 0x450   :  { %2577 = vmatpush1.msra.mxu0 %v2539_v23 }
 0x451   :  { %v2693_v24 = vpop.permute.xlu0 %2692  ;;  %3129 = vmatmul.mubr.msk.f32.vlgmr.msra.gmra.mxu0 %vm43_vm1, %v3128_v22  ;;  %v2535_v25 = vpop.permute.xlu1 %2534 }
 0x452   :  { %v2537_v26 = vsel %vm2536_vm13, %v2533_v18, %v2535_v25  ;;  %v2540_v27 = vsel %vm2536_vm13, %v2535_v25, %v2529_v14  ;;  %2773 = vmatprep.mubr.f32.mxu0 %v3163_v2  ;;  %v2702_v33 = vsel %vm506_vm3, %v2693_v24, %v2695_v17 }
 0x453   :  { %2647 = vmatprep.subr.mxu1 %v2540_v27 }
 0x454   :  { %2648 = vmatpush1.msra.mxu1 %v2537_v26 }
 0x455   :  { %3130 = vmatmul.mubr.msk.f32.vlgmr.msra.gmra.mxu1 %vm43_vm1, %v3128_v22  ;;  %v2697_v28 = vpop.permute.xlu1 %2696  ;;  %v2858_v29 = vpop.permute.xlu0 %2857 }
 0x456   :  { %v2701_v31 = vsel %vm506_vm3, %v2695_v17, %v2697_v28  ;;  %2844 = vmatprep.mubr.f32.mxu1 %v3163_v2 }
 0x457   :  { %2739 = vmatprep.subr.mxu0 %v2701_v31 }
 0x458   :  { %2740 = vmatpush1.msra.mxu0 %v2702_v33 }
 0x459   :  { %3132 = vmatmul.mubr.msk.f32.vlgmr.msra.gmra.mxu0 %vm43_vm1, %v3131_v32  ;;  %v2699_v34 = vpop.permute.xlu1 %2698  ;;  %v2856_v38 = vpop.permute.xlu0 %2855 }
 0x45a   :  { %v2700_v35 = vsel %vm506_vm3, %v2697_v28, %v2699_v34  ;;  %v2703_v37 = vsel %vm506_vm3, %v2699_v34, %v2693_v24  ;;  %2936 = vmatprep.mubr.f32.mxu0 %v3163_v2  ;;  %v2865_v42 = vsel %vm670_vm4, %v2856_v38, %v2858_v29 }
 0x45b   :  { %2810 = vmatprep.subr.mxu1 %v2703_v37 }
 0x45c   :  { %2811 = vmatpush1.msra.mxu1 %v2700_v35 }
 0x45d   :  { %3133 = vmatmul.mubr.msk.f32.vlgmr.msra.gmra.mxu1 %vm43_vm1, %v3131_v32  ;;  %v2860_v39 = vpop.permute.xlu1 %2859 }
 0x45e   :  { %v2864_v40 = vsel %vm670_vm4, %v2858_v29, %v2860_v39  ;;  %3007 = vmatprep.mubr.f32.mxu1 %v3163_v2 }
 0x45f   :  { %2902 = vmatprep.subr.mxu0 %v2864_v40 }
 0x460   :  { %2903 = vmatpush1.msra.mxu0 %v2865_v42 }
 0x461   :  { %3135 = vmatmul.mubr.msk.f32.vlgmr.msra.gmra.mxu0 %vm43_vm1, %v3134_v41  ;;  %v2862_v43 = vpop.permute.xlu1 %2861 }
 0x462   :  { %v2863_v44 = vsel %vm670_vm4, %v2860_v39, %v2862_v43  ;;  %v2866_v45 = vsel %vm670_vm4, %v2862_v43, %v2856_v38 }
 0x463   :  { %2973 = vmatprep.subr.mxu1 %v2866_v45 }
 0x464   :  { %2974 = vmatpush1.msra.mxu1 %v2863_v44 }
 0x465   :  { %3136 = vmatmul.mubr.msk.f32.vlgmr.msra.gmra.mxu1 %vm43_vm1, %v3134_v41 }
 0x4e9   :  { %v1665_v46 = vpop.f32.mrf.mxu0 }
 0x4eb   :  { %v1667_v2 = vpop.f32.mrf.mxu0 }
 0x4ed   :  { %v1810_v48 = vpop.f32.mrf.mxu0 }
 0x4ee   :  { %v1811_v63 = vadd.f32 %v1810_v48, %v1665_v46 }
 0x4ef   :  { %v1812_v50 = vpop.f32.mrf.mxu0 }
 0x4f0   :  { %v1813_v4 = vadd.f32 %v1812_v50, %v1667_v2 }
 0x4f1   :  { %v1736_v47 = vpop.f32.mrf.mxu1 }
 0x4f3   :  { %v1738_v49 = vpop.f32.mrf.mxu1 }
 0x4f5   :  { %v1881_v51 = vpop.f32.mrf.mxu1 }
 0x4f6   :  { %v1882_v7 = vadd.f32 %v1881_v51, %v1736_v47 }
 0x4f7   :  { %v1883_v53 = vpop.f32.mrf.mxu1 }
 0x4f8   :  { %v1884_v11 = vadd.f32 %v1883_v53, %v1738_v49 }
 0x4f9   :  { %v1970_v52 = vpop.f32.mrf.mxu0 }
 0x4fa   :  { %v2046_v8 = vadd.f32 %v1970_v52, %v1811_v63 }
 0x4fb   :  { %v1972_v54 = vpop.f32.mrf.mxu0 }
 0x4fc   :  { %v2047_v12 = vadd.f32 %v1972_v54, %v1813_v4 }
 0x4fd   :  { %v2041_v55 = vpop.f32.mrf.mxu1 }
 0x4fe   :  { %v2048_v13 = vadd.f32 %v2041_v55, %v1882_v7 }
 0x4ff   :  { %v2043_v57 = vpop.f32.mrf.mxu1 }
 0x500   :  { %v2049_v16 = vadd.f32 %v2043_v57, %v1884_v11 }
 0x501   :  { %v2134_v56 = vpop.f32.mrf.mxu0 }
 0x502   :  { %v2210_v14 = vadd.f32 %v2134_v56, %v2046_v8 }
 0x503   :  { %v2136_v58 = vpop.f32.mrf.mxu0 }
 0x504   :  { %v2211_v17 = vadd.f32 %v2136_v58, %v2047_v12 }
 0x505   :  { %v2205_v6 = vpop.f32.mrf.mxu1 }
 0x506   :  { %v2285_v59 = vpop.f32.mrf.mxu0  ;;  %v2212_v18 = vadd.f32 %v2205_v6, %v2048_v13 }
 0x507   :  { %v2207_v60 = vpop.f32.mrf.mxu1  ;;  %v2361_v21 = vadd.f32 %v2285_v59, %v2210_v14 }
 0x508   :  { %v2287_v61 = vpop.f32.mrf.mxu0  ;;  %v2213_v25 = vadd.f32 %v2207_v60, %v2049_v16  ;;  %v3179_v16 = vmov 2  }
 0x509   :  { %v2356_v62 = vpop.f32.mrf.mxu1  ;;  %v2362_v26 = vadd.f32 %v2287_v61, %v2211_v17  ;;  %3157 = vset.pattern.permute.xlu1 %v3179_v16 }
 0x50a   :  { %v2448_v1 = vpop.f32.mrf.mxu0  ;;  %v2363_v27 = vadd.f32 %v2356_v62, %v2212_v18 }
 0x50b   :  { %v2358_v3 = vpop.f32.mrf.mxu1  ;;  %v2524_v28 = vadd.f32 %v2448_v1, %v2361_v21 }
 0x50c   :  { %v2450_v9 = vpop.f32.mrf.mxu0  ;;  %v2364_v35 = vadd.f32 %v2358_v3, %v2213_v25 }
 0x50d   :  { %v2519_v10 = vpop.f32.mrf.mxu1  ;;  %v2525_v31 = vadd.f32 %v2450_v9, %v2362_v26 }
 0x50e   :  { %v2526_v37 = vadd.f32 %v2519_v10, %v2363_v27 }
 0x50f   :  { %v2521_v15 = vpop.f32.mrf.mxu1 }
 0x510   :  { %v2527_v41 = vadd.f32 %v2521_v15, %v2364_v35 }
 0x511   :  { %v2612_v5 = vpop.f32.mrf.mxu0 }
 0x512   :  { %v2688_v32 = vadd.f32 %v2612_v5, %v2524_v28 }
 0x513   :  { %v2614_v22 = vpop.f32.mrf.mxu0 }
 0x514   :  { %v2689_v38 = vadd.f32 %v2614_v22, %v2525_v31 }
 0x515   :  { %v2683_v23 = vpop.f32.mrf.mxu1 }
 0x516   :  { %v2690_v42 = vadd.f32 %v2683_v23, %v2526_v37 }
 0x517   :  { %v2685_v29 = vpop.f32.mrf.mxu1 }
 0x518   :  { %v2691_v2 = vadd.f32 %v2685_v29, %v2527_v41 }
 0x519   :  { %v2775_v24 = vpop.f32.mrf.mxu0 }
 0x51a   :  { %v2851_v39 = vadd.f32 %v2775_v24, %v2688_v32 }
 0x51b   :  { %v2777_v33 = vpop.f32.mrf.mxu0 }
 0x51c   :  { %v2852_v43 = vadd.f32 %v2777_v33, %v2689_v38 }
 0x51d   :  { %v2846_v34 = vpop.f32.mrf.mxu1 }
 0x51e   :  { %v2853_v47 = vadd.f32 %v2846_v34, %v2690_v42 }
 0x51f   :  { %v2848_v45 = vpop.f32.mrf.mxu1 }
 0x520   :  { %v2854_v50 = vadd.f32 %v2848_v45, %v2691_v2 }
 0x521   :  { %v2938_v40 = vpop.f32.mrf.mxu0 }
 0x522   :  { %v3014_v44 = vadd.f32 %v2938_v40, %v2851_v39 }
 0x523   :  { %v2940_v46 = vpop.f32.mrf.mxu0 }
 0x524   :  { %v3015_v48 = vadd.f32 %v2940_v46, %v2852_v43  ;;  %v3018_v51 = vmul.f32 %v3014_v44, %v3391_v19 }
 0x525   :  { %v3009_v49 = vpop.f32.mrf.mxu1 }
 0x526   :  { %v3019_v52 = vmul.f32 %v3015_v48, %v3393_v20  ;;  %v3016_v53 = vadd.f32 %v3009_v49, %v2853_v47 }
 0x527   :  { %v3011_v54 = vpop.f32.mrf.mxu1 }
 0x528   :  { %v3020_v55 = vmul.f32 %v3016_v53, %v3397_v30  ;;  %v3017_v56 = vadd.f32 %v3011_v54, %v2854_v50  ;;  %v3022_v57 = vadd.f32 %v3019_v52, %v3018_v51 }
 0x52a   :  { %v3021_v58 = vmul.f32 %v3017_v56, %v3401_v36  ;;  %v3023_v6 = vadd.f32 %v3022_v57, %v3020_v55 }
 0x52c   :  { %v3024_v59 = vadd.f32 %v3023_v6, %v3021_v58 }
 0x52e   :  { %3025 = vadd.xlane.f32.xlu0 %v3024_v59 }
 0x5b7   :  { %v3026_v60 = vpop.xlane.xlu0 %3025 }
 0x5b8   :  { %v3027_v61 = vmul.f32 0.0025510204, %v3026_v60 }
 0x5ba   :  { %v3028_v62 = vsub.f32 %v3014_v44, %v3027_v61  ;;  %v3029_v63 = vsub.f32 %v3015_v48, %v3027_v61  ;;  %v3030_v1 = vsub.f32 %v3016_v53, %v3027_v61  ;;  %v3031_v3 = vsub.f32 %v3017_v56, %v3027_v61 }
 0x5bc   :  { %v3032_v4 = vmul.f32 %v3028_v62, %v3391_v19  ;;  %v3033_v7 = vmul.f32 %v3029_v63, %v3393_v20  ;;  %v3034_v8 = vmul.f32 %v3030_v1, %v3397_v30  ;;  %v3035_v9 = vmul.f32 %v3031_v3, %v3401_v36 }
 0x5bd   :  { %v3180_v19 = vmov 3  }
 0x5be   :  { %v3036_v10 = vmul.f32 %v3032_v4, %v3032_v4  ;;  %v3037_v11 = vmul.f32 %v3033_v7, %v3033_v7  ;;  %v3038_v12 = vmul.f32 %v3034_v8, %v3034_v8  ;;  %v3039_v14 = vmul.f32 %v3035_v9, %v3035_v9  ;;  %3158 = vset.pattern.permute.xlu0 %v3180_v19 }
 0x5c0   :  { %v3040_v13 = vadd.f32 %v3037_v11, %v3036_v10 }
 0x5c2   :  { %v3041_v5 = vadd.f32 %v3040_v13, %v3038_v12 }
 0x5c4   :  { %v3042_v15 = vadd.f32 %v3041_v5, %v3039_v14 }
 0x5c6   :  { %3043 = vadd.xlane.f32.xlu1 %v3042_v15 }
 0x64f   :  { %v3044_v17 = vpop.xlane.xlu1 %3043 }
 0x650   :  { %v3045_v18 = vmul.f32 0.0025510204, %v3044_v17 }
 0x652   :  { %v3046_v21 = vadd.f32 1e-05, %v3045_v18 }
 0x654   :  { %3161 = vrsqrt.f32 %v3046_v21 }
 0x661   :  { %v3162_v20 = vpop.eup %3161 }
 0x662   :  { %v3048_v30 = vmul.f32 %v3162_v20, %v3414_v0 }
 0x664   :  { %3057 = vperm.xlu1 %3157, %v3048_v30   ;;  %v3049_v36 = vmul.f32 %v3048_v30, %v3027_v61 }
 0x666   :  { %3051 = vrot.lane.b32.xlu0 %v3049_v36, %s3174_s30 }
 0x6d8   :  { %v3052_v22 = vpop.permute.xlu0 %3051 }
 0x6d9   :  { %v3054_v23 = vsub.f32 %v3414_v0, %v3052_v22 }
 0x6db   :  { %3066 = vperm.xlu0 %3158, %v3054_v23  }
 0x6df   :  { %v3058_v24 = vpop.permute.xlu1 %3057 }
 0x6e0   :  { %v3060_v25 = vmul.f32 %v3058_v24, %v3014_v44  ;;  %v3061_v26 = vmul.f32 %v3058_v24, %v3015_v48  ;;  %v3062_v27 = vmul.f32 %v3058_v24, %v3016_v53  ;;  %v3063_v28 = vmul.f32 %v3058_v24, %v3017_v56 }
 0x756   :  { %v3067_v29 = vpop.permute.xlu0 %3066 }
 0x757   :  { %v3069_v31 = vadd.f32 %v3067_v29, %v3060_v25  ;;  %v3070_v32 = vadd.f32 %v3067_v29, %v3061_v26  ;;  %v3071_v33 = vadd.f32 %v3067_v29, %v3062_v27  ;;  %v3072_v34 = vadd.f32 %v3067_v29, %v3063_v28 }
 0x759   :  { %v3073_v35 = vmax.f32 %v3069_v31, 0.0  ;;  %v3074_v37 = vmax.f32 %v3070_v32, 0.0  ;;  %v3075_v38 = vmax.f32 %v3071_v33, 0.0  ;;  %v3076_v39 = vmax.f32 %v3072_v34, 0.0 }
 0x75b   :  { %3077 = vst [vmem:[%s3626_s5] sm:$0xff] %v3073_v35  ;;  %3078 = vst [vmem:[%s3626_s5 + $0x8] sm:$0xff] %v3074_v37 }
 0x75c   :  { %3079 = vst [vmem:[%s3626_s5 + $0x10] sm:$0xff] %v3075_v38  ;;  %3080 = vst [vmem:[%s3626_s5 + $0x18] sm:$0xff] %v3076_v39 }

</bundles_post_ra>
